<compile_context>
chip_gen: v7x
topology: tpu7x:2x2x1
jax: 0.10.0
libtpu: 0.0.40
codegen_flags: <defaults>
</compile_context>

<pallas_src>
import functools

import jax
import jax.numpy as jnp
from jax.experimental import pallas as pl
from jax.experimental.pallas import tpu as pltpu

IN_FEATURES = 4
HIDDEN = 64

_TB_CAP = 128 * 1024            # upper cap on samples per batch tile (mult. of 128)
_BLOCK_VMEM_BUDGET = 8 << 20    # bytes allowed for double-buffered x/out blocks
_VMEM_LIMIT_BYTES = 32 << 20    # <= physical VMEM on v5e/v6e/v7x
_SMALL_BATCH_THRESHOLD = 4096   # below this, fused XLA beats Pallas dispatch


def _mlp_kernel(xt_ref, w1_ref, b1_ref, w2_ref, b2_ref, ot_ref):
    # xt_ref : [4, TILE_B]   (batch on lanes -> lane-dense loads)
    # w1_ref : [64, 4]       (PyTorch [out, in] layout)
    # b1_ref : [64, 1]
    # w2_ref : [A, 64]
    # b2_ref : [A, 1]
    # ot_ref : [A, TILE_B]   (batch on lanes -> lane-dense stores)
    xt = xt_ref[...]

    # Layer 1, K = 4: on the MXU.  The vmatmul/pop slots are nearly idle (only
    # layer 2 otherwise), while the VALU would saturate doing 4 broadcast-FMAs
    # per sample at large tiles -- so this is effectively free on the MXU.
    h = jnp.dot(w1_ref[...], xt, preferred_element_type=jnp.float32) + b1_ref[...]
    h = jnp.maximum(h, 0.0)  # ReLU, [64, TILE_B]

    # Layer 2, K = 64: MXU matmul, f32 accumulation, lane-dense [A, TILE_B] out.
    out = jnp.dot(w2_ref[...], h, preferred_element_type=jnp.float32) + b2_ref[...]
    ot_ref[...] = out.astype(ot_ref.dtype)


def _select_tile(B, A, tile_b):
    """Pick the batch tile (lane dim): big, 128-aligned, VMEM- and megacore-aware."""
    cap = _TB_CAP if tile_b is None else tile_b
    if B <= 128:
        return B  # single block; block dims equal to full array dims are legal
    # Double-buffered f32 x block (4*tb) + out block (A*tb) must fit the budget.
    bytes_per_sample = 2 * 4 * (IN_FEATURES + A)
    vmem_cap = _BLOCK_VMEM_BUDGET // bytes_per_sample
    tb = min(cap, B, vmem_cap)
    # Keep >= 2 grid steps so both v7x TensorCores get work on the "parallel" axis.
    if B >= 256:
        tb = min(tb, -(-B // 2))  # cdiv(B, 2)
    tb = max(128, (tb // 128) * 128)  # 128-aligned, never a giant single block
    return tb


@functools.partial(jax.jit, static_argnames=("tile_b",))
def linear_estimator_forward_t(xt, w1, b1, w2, b2, *, tile_b=None):
    """Performance entry point (layout contract, no HBM transposes).

    xt: [4, B] feature-major input; w1: [64, 4]; b1: [64]; w2: [A, 64]; b2: [A].
    Returns [A, B] action-major output.
    """
    _, B = xt.shape
    A = w2.shape[0]
    tb = _select_tile(B, A, tile_b)
    grid = (pl.cdiv(B, tb),)

    b1c = b1.reshape(HIDDEN, 1)  # column biases broadcast along lanes (tiny)
    b2c = b2.reshape(A, 1)

    cost = pl.CostEstimate(
        flops=2 * B * (IN_FEATURES * HIDDEN + HIDDEN * A),
        transcendentals=0,
        bytes_accessed=4 * (B * (IN_FEATURES + A)
                            + HIDDEN * IN_FEATURES + HIDDEN + A * HIDDEN + A),
    )

    return pl.pallas_call(
        _mlp_kernel,
        out_shape=jax.ShapeDtypeStruct((A, B), jnp.float32),
        grid=grid,
        in_specs=[
            # x^T: tiled along the batch (lane) axis.
            pl.BlockSpec((IN_FEATURES, tb), lambda i: (0, i)),
            # Weights/biases: full arrays, constant index_map -> stay resident
            # in VMEM across all grid steps (no re-DMA).
            pl.BlockSpec((HIDDEN, IN_FEATURES), lambda i: (0, 0)),
            pl.BlockSpec((HIDDEN, 1), lambda i: (0, 0)),
            pl.BlockSpec((A, HIDDEN), lambda i: (0, 0)),
            pl.BlockSpec((A, 1), lambda i: (0, 0)),
        ],
        out_specs=pl.BlockSpec((A, tb), lambda i: (0, i)),
        compiler_params=pltpu.CompilerParams(
            # Batch tiles are independent -> shard across both TCs on v7x.
            dimension_semantics=("parallel",),
            vmem_limit_bytes=_VMEM_LIMIT_BYTES,
        ),
        cost_estimate=cost,
    )(xt, w1, b1c, w2, b2c)


@functools.partial(
    jax.jit, static_argnames=("tile_b", "small_batch_threshold", "force_kernel"))
def linear_estimator_forward(x, w1, b1, w2, b2, *, tile_b=None,
                             small_batch_threshold=_SMALL_BATCH_THRESHOLD,
                             force_kernel=False):
    """PyTorch-semantics wrapper: x [B, 4] f32 -> [B, A] f32."""
    B = x.shape[0]
    if B < small_batch_threshold and not force_kernel:
        # Small-batch fast path: one fused XLA expression beats the Pallas
        # dispatch plus two layout transposes at RL-style batch sizes.
        return jnp.maximum(x @ w1.T + b1, 0.0) @ w2.T + b2
    # NOTE: for peak throughput keep x feature-major end-to-end and call
    # linear_estimator_forward_t directly; these two transposes exist only to
    # preserve the PyTorch [B,4] -> [B,A] interface and add extra HBM passes.
    return linear_estimator_forward_t(x.T, w1, b1, w2, b2, tile_b=tile_b).T


def init_params(key, num_actions):
    """nn.Linear-style U(-1/sqrt(fan_in), 1/sqrt(fan_in)) init.

    Weights returned in native PyTorch [out_features, in_features] layout.
    """
    k1, k2, k3, k4 = jax.random.split(key, 4)
    bound1 = 1.0 / jnp.sqrt(4.0)
    w1 = jax.random.uniform(k1, (HIDDEN, IN_FEATURES), jnp.float32, -bound1, bound1)
    b1 = jax.random.uniform(k2, (HIDDEN,), jnp.float32, -bound1, bound1)
    bound2 = 1.0 / jnp.sqrt(float(HIDDEN))
    w2 = jax.random.uniform(k3, (num_actions, HIDDEN), jnp.float32, -bound2, bound2)
    b2 = jax.random.uniform(k4, (num_actions,), jnp.float32, -bound2, bound2)
    return w1, b1, w2, b2


if __name__ == "__main__":
    num_actions = 2
    key = jax.random.PRNGKey(0)
    kx, kp = jax.random.split(key)
    w1, b1, w2, b2 = init_params(kp, num_actions)

    def ref_fn(x):
        return jnp.maximum(x @ w1.T + b1, 0.0) @ w2.T + b2

    # 1) Layout-contract kernel path: B=384, tile 128 -> 3 even grid steps.
    x1 = jax.random.normal(kx, (384, IN_FEATURES), dtype=jnp.float32)
    out_t = jax.block_until_ready(
        linear_estimator_forward_t(x1.T, w1, b1, w2, b2, tile_b=128))
    assert out_t.shape == (num_actions, 384)
    assert jnp.allclose(out_t, ref_fn(x1).T, atol=5e-5, rtol=5e-5), "mismatch (even)"

    # 2) Ragged last block: B=200, tile 128 -> 2 steps, last one masked by Pallas.
    x2 = jax.random.normal(jax.random.PRNGKey(1), (200, IN_FEATURES),
                           dtype=jnp.float32)
    out_t2 = jax.block_until_ready(
        linear_estimator_forward_t(x2.T, w1, b1, w2, b2, tile_b=128))
    assert out_t2.shape == (num_actions, 200)
    assert jnp.allclose(out_t2, ref_fn(x2).T, atol=5e-5, rtol=5e-5), "mismatch (ragged)"

    # 3) PyTorch-semantics wrapper: forced kernel path and small-batch fast path.
    x3 = jax.random.normal(jax.random.PRNGKey(2), (256, IN_FEATURES),
                           dtype=jnp.float32)
    ref3 = ref_fn(x3)
    out_k = jax.block_until_ready(
        linear_estimator_forward(x3, w1, b1, w2, b2, force_kernel=True))
    out_f = jax.block_until_ready(linear_estimator_forward(x3, w1, b1, w2, b2))
    assert out_k.shape == (256, num_actions)
    assert jnp.allclose(out_k, ref3, atol=5e-5, rtol=5e-5), "mismatch (wrapper kernel)"
    assert jnp.allclose(out_f, ref3, atol=5e-5, rtol=5e-5), "mismatch (fast path)"

    print("KERNEL_OK")
</pallas_src>

<mosaic_0001>
module attributes {stable_mosaic.version = 11 : i64} {
  func.func @_mlp_kernel(%arg0: i32, %arg1: memref<4x128xf32, #tpu.memory_space<vmem>>, %arg2: memref<64x4xf32, #tpu.memory_space<vmem>>, %arg3: memref<64x1xf32, #tpu.memory_space<vmem>>, %arg4: memref<2x64xf32, #tpu.memory_space<vmem>>, %arg5: memref<2x1xf32, #tpu.memory_space<vmem>>, %arg6: memref<2x128xf32, #tpu.memory_space<vmem>>) attributes {dimension_semantics = [#tpu.dimension_semantics<parallel>], iteration_bounds = array<i64: 3>, scalar_prefetch = 0 : i64, scratch_operands = 0 : i64, tpu.core_type = #tpu.core_type<tc>, window_params = [{transform_indices = @transform_0, window_bounds = array<i64: 4, 128>}, {pipeline_mode = #tpu.pipeline_mode<synchronous>, transform_indices = @transform_1, window_bounds = array<i64: 64, 4>}, {pipeline_mode = #tpu.pipeline_mode<synchronous>, transform_indices = @transform_2, window_bounds = array<i64: 64, 1>}, {pipeline_mode = #tpu.pipeline_mode<synchronous>, transform_indices = @transform_3, window_bounds = array<i64: 2, 64>}, {pipeline_mode = #tpu.pipeline_mode<synchronous>, transform_indices = @transform_4, window_bounds = array<i64: 2, 1>}, {transform_indices = @transform_5, window_bounds = array<i64: 2, 128>}]} {
    %c0 = arith.constant 0 : index
    %c0_0 = arith.constant 0 : index
    %0 = vector.load %arg1[%c0, %c0_0] : memref<4x128xf32, #tpu.memory_space<vmem>>, vector<4x128xf32>
    %c0_1 = arith.constant 0 : index
    %c0_2 = arith.constant 0 : index
    %1 = vector.load %arg2[%c0_1, %c0_2] : memref<64x4xf32, #tpu.memory_space<vmem>>, vector<64x4xf32>
    %cst = arith.constant dense<0.000000e+00> : vector<64x128xf32>
    %2 = tpu.matmul %1, %0, %cst {dimension_numbers = #tpu.dot_dimension_numbers<[1], [0], [0], [1], [0, 0, 1, 1], [], []>} : vector<64x4xf32>, vector<4x128xf32>, vector<64x128xf32> -> vector<64x128xf32>
    %c0_3 = arith.constant 0 : index
    %c0_4 = arith.constant 0 : index
    %3 = vector.load %arg3[%c0_3, %c0_4] : memref<64x1xf32, #tpu.memory_space<vmem>>, vector<64x1xf32>
    %4 = vector.broadcast %3 : vector<64x1xf32> to vector<64x128xf32>
    %5 = arith.addf %2, %4 : vector<64x128xf32>
    %cst_5 = arith.constant 0.000000e+00 : f32
    %6 = vector.broadcast %cst_5 : f32 to vector<64x128xf32>
    %7 = arith.maximumf %5, %6 : vector<64x128xf32>
    %c0_6 = arith.constant 0 : index
    %c0_7 = arith.constant 0 : index
    %8 = vector.load %arg4[%c0_6, %c0_7] : memref<2x64xf32, #tpu.memory_space<vmem>>, vector<2x64xf32>
    %cst_8 = arith.constant dense<0.000000e+00> : vector<2x128xf32>
    %9 = tpu.matmul %8, %7, %cst_8 {dimension_numbers = #tpu.dot_dimension_numbers<[1], [0], [0], [1], [0, 0, 1, 1], [], []>} : vector<2x64xf32>, vector<64x128xf32>, vector<2x128xf32> -> vector<2x128xf32>
    %c0_9 = arith.constant 0 : index
    %c0_10 = arith.constant 0 : index
    %10 = vector.load %arg5[%c0_9, %c0_10] : memref<2x1xf32, #tpu.memory_space<vmem>>, vector<2x1xf32>
    %11 = vector.broadcast %10 : vector<2x1xf32> to vector<2x128xf32>
    %12 = arith.addf %9, %11 : vector<2x128xf32>
    %c0_11 = arith.constant 0 : index
    %c0_12 = arith.constant 0 : index
    %13 = vector.load %arg6[%c0_11, %c0_12] : memref<2x128xf32, #tpu.memory_space<vmem>>, vector<2x128xf32>
    tpu.vector_store %arg6[%c0_11, %c0_12], %12 {strides = array<i32>} : memref<2x128xf32, #tpu.memory_space<vmem>>, vector<2x128xf32>,
    return
  }
  func.func @transform_0(%arg0: i32) -> (i32, i32) {
    %c0_i32 = arith.constant 0 : i32
    %c0_i32_0 = arith.constant 0 : i32
    return %c0_i32, %arg0 : i32, i32
  }
  func.func @transform_1(%arg0: i32) -> (i32, i32) {
    %c0_i32 = arith.constant 0 : i32
    %c0_i32_0 = arith.constant 0 : i32
    %c0_i32_1 = arith.constant 0 : i32
    return %c0_i32, %c0_i32_0 : i32, i32
  }
  func.func @transform_2(%arg0: i32) -> (i32, i32) {
    %c0_i32 = arith.constant 0 : i32
    %c0_i32_0 = arith.constant 0 : i32
    %c0_i32_1 = arith.constant 0 : i32
    return %c0_i32, %c0_i32_0 : i32, i32
  }
  func.func @transform_3(%arg0: i32) -> (i32, i32) {
    %c0_i32 = arith.constant 0 : i32
    %c0_i32_0 = arith.constant 0 : i32
    %c0_i32_1 = arith.constant 0 : i32
    return %c0_i32, %c0_i32_0 : i32, i32
  }
  func.func @transform_4(%arg0: i32) -> (i32, i32) {
    %c0_i32 = arith.constant 0 : i32
    %c0_i32_0 = arith.constant 0 : i32
    %c0_i32_1 = arith.constant 0 : i32
    return %c0_i32, %c0_i32_0 : i32, i32
  }
  func.func @transform_5(%arg0: i32) -> (i32, i32) {
    %c0_i32 = arith.constant 0 : i32
    %c0_i32_0 = arith.constant 0 : i32
    return %c0_i32, %arg0 : i32, i32
  }
}

</mosaic_0001>

<bundles_post_ra>
// kernel: linear_estimator_forward_t.1
= control target key start
LH: loop header
LB: loop body
LE: loop exit
PB: predicated region body
PF: predicated region fallthrough
CT: control target
= control target key end

     0   :  { %10 = vsyncpa [#allocation3], 0  ;;  %s963_s0 = inlined_call_operand.vmem [shape: f32[4,384], index: 0, kind: input, shape index: {}]   ;;  %s964_s1 = inlined_call_operand.vmem [shape: f32[64,4], index: 1, kind: input, shape index: {}]   ;;  %s965_s2 = inlined_call_operand.vmem [shape: f32[64,1], index: 2, kind: input, shape index: {}]   ;;  %s966_s3 = inlined_call_operand.vmem [shape: f32[2,64], index: 3, kind: input, shape index: {}]   ;;  %s967_s4 = inlined_call_operand.vmem [shape: f32[2,1], index: 4, kind: input, shape index: {}]   ;;  %s968_s5 = inlined_call_operand.hbm [shape: f32[2,384], index: 5, kind: output, shape index: {}]  }
   0x1   :  { %12 = vsyncpa [#allocation3 + $0x1], 0  ;;  %s801_s18 = smov 0   ;;  %s803_s19 = smov 0  }
   0x2   :  { %s805_s20 = smov 0   ;;  %s807_s21 = smov 0  }
   0x3 LB: > { %s822_s22 = sadd.s32 4294967295, %s764_s21   ;;  %s574_s23 = sadd.s32 4294967294, %s764_s21   ;;  %s764_s21 = sphi %s807_s21, %s974_s21   ;;  %s760_s20 = sphi %s805_s20, %s973_s20   ;;  %s756_s19 = sphi %s803_s19, %s972_s19   ;;  %s752_s18 = sphi %s801_s18, %s971_s18  }
   0x4   : > { %s826_s24 = sadd.s32 1, %s764_s21   ;;  %s135_s25 = sadd.s32 1, %s760_s20 }
   0x5   : > { %s132_s26 = ssub.s32 %s764_s21, %s826_s24  ;;  %p145_p0 = scmp.ne.s32.totalorder %s760_s20, %s756_s19 }
   0x6   : > { %p133_p1 = scmp.eq.s32.totalorder %s132_s26, 0  ;;  %p146_p2 = scmp.eq.s32.totalorder %s822_s22, 2 }
   0x7   : > { %p151_p3 = scmp.ne.s32.totalorder %s756_s19, %s752_s18  ;;  %p152_p4 = scmp.eq.s32.totalorder %s574_s23, 2 }
   0x8   : > { %s837_s27 = scalar_select %p133_p1, %s760_s20, %s135_s25  }
   0x9   : > { %p839_p5 = por %p146_p2, %p145_p0  ;;  %p843_p6 = por %p152_p4, %p151_p3 }
   0xa   : > { %p577_p7 = scmp.ge.s32.totalorder %s764_s21, 1  ;;  %p189_p8 = scmp.lt.s32.totalorder %s764_s21, 4 }
   0xc   : > { %p190_p9 = pnand %p577_p7, %p189_p8 }
   0xd   : > { %p216_p10 = scmp.lt.s32.totalorder (!%p190_p9), %s822_s22, 2  ;;  %v221_v0 = vld [vmem:[%s964_s1] sm:$0xff] (!%p190_p9)  ;;  %vm277_vm0 = vcmask (!%p190_p9), 31744   ;;  %v766_v1 = vmov (!%p190_p9), 0   ;;  %v231_v3 = vld [vmem:[%s965_s2 + $0x10] sm:$0xff] (!%p190_p9)  ;;  %vm302_vm1 = vcmask (!%p190_p9), 1043456  }
   0xe   : > { %193 = sbr.rel (%p190_p9) target bundleno = 490 (0x1ea), region = 40  ;;  %614 = vmatprep.mubr.msk.f32.mxu0 (!%p190_p9), %vm277_vm0, %v221_v0  ;;  %700 = vset.pattern.permute.xlu0 (!%p190_p9), %v766_v1  ;;  %v229_v2 = vld [vmem:[%s965_s2] sm:$0xff] (!%p190_p9)  ;;  %v230_v4 = vld [vmem:[%s965_s2 + $0x8] sm:$0xff] (!%p190_p9)  ;;  %v232_v5 = vld [vmem:[%s965_s2 + $0x18] sm:$0xff] (!%p190_p9)  ;;  %v767_v19 = vmov (!%p190_p9), 0.0|0.0   ;;  %vm768_vm2 = vmmov (!%p190_p9), 0  }
   0xf   : > { %701 = vset.pattern.permute.xlu1 (!%p190_p9), %v766_v1  ;;  %239 = vperm.xlu0 (!%p190_p9), %700, %v229_v2   ;;  %v222_v7 = vld [vmem:[%s964_s1 + $0x8] sm:$0xff] (!%p190_p9)  ;;  %v223_v8 = vld [vmem:[%s964_s1 + $0x10] sm:$0xff] (!%p190_p9)  ;;  %v233_v9 = vld [vmem:[%s965_s2 + $0x20] sm:$0xff] (!%p190_p9)  ;;  %v769_v20 = vmov (!%p190_p9), 0.0   ;;  %vm426_vm3 = vcmask (!%p190_p9), 523264   ;;  %s213_s14 = sand.u32 (!%p190_p9), 1, %s756_s19  }
  0x10   : > { %249 = vperm.xlu1 (!%p190_p9), %701, %v231_v3   ;;  %v234_v10 = vld [vmem:[%s965_s2 + $0x28] sm:$0xff] (!%p190_p9)  ;;  %v224_v11 = vld [vmem:[%s964_s1 + $0x18] sm:$0xff] (!%p190_p9)  ;;  %v225_v12 = vld [vmem:[%s964_s1 + $0x20] sm:$0xff] (!%p190_p9)  ;;  %645 = vmatprep.subr.bf16.mxu1 (!%p190_p9), %v767_v19  ;;  %s578_s15 = sshll.u32 (!%p190_p9), %s213_s14, 1  ;;  %s591_s16 = sshll.u32 (!%p190_p9), %s822_s22, 5 }
  0x11   : > { %v235_v13 = vld [vmem:[%s965_s2 + $0x30] sm:$0xff] (!%p190_p9)  ;;  %v236_v14 = vld [vmem:[%s965_s2 + $0x38] sm:$0xff] (!%p190_p9)  ;;  %v226_v15 = vld [vmem:[%s964_s1 + $0x28] sm:$0xff] (!%p190_p9)  ;;  %642 = vmatprep.mubr.msk.f32.mxu1 (!%p190_p9), %vm768_vm2, %v769_v20  ;;  %s921_s30 = scalar_lea.hbm (!%p190_p9), %s968_s5, %s591_s16  ;;  %s502_s6 = scalar_lea.sflag (!%p190_p9), [#allocation3], %s213_s14 }
  0x12   : > { %v227_v16 = vld [vmem:[%s964_s1 + $0x30] sm:$0xff] (!%p190_p9)  ;;  %v420_v17 = vld [vmem:[%s967_s4] sm:$0x3] (!%p190_p9)  ;;  %v228_v18 = vld [vmem:[%s964_s1 + $0x38] sm:$0xff] (!%p190_p9) }
  0x13   : > { %244 = vperm.xlu0 (!%p190_p9), %700, %v230_v4   ;;  %v419_v57 = vld [vmem:[%s966_s3] sm:$0x3] (!%p190_p9) }
  0x14   : > { %254 = vperm.xlu1 (!%p190_p9), %701, %v232_v5  }
  0x15   : > { %s217_s7 = scalar_select %p216_p10, %s822_s22, 2 }
  0x16   : > { %s770_s22 = smov [#allocation2]  }
  0x17   : > { %s579_s12 = sshll.u32 %s217_s7, 2  ;;  %259 = vperm.xlu0 %700, %v233_v9   ;;  %s706_s8 = sshll.u32 %s770_s22, 4  ;;  %s707_s8 = int_to_ptr.vmem [resolvable:$false] %s706_s8 }
  0x18   : > { %s219_s17 = scalar_lea.vmem %s963_s0, %s579_s12  ;;  %264 = vperm.xlu1 %701, %v234_v10   ;;  %s708_s9 = scalar_lea.vmem %s707_s8, 64 }
  0x19   : > { %v220_v6 = vld [vmem:[%s219_s17] sm:$0xf]  ;;  %s215_s17 = scalar_lea.vmem [#allocation2], %s578_s15 }
  0x1a   : > { %612 = vmatprep.subr.msk.mxu0 %vm302_vm1, %v220_v6  ;;  %s515_s23 = sshll.u32 %s215_s17, 4  ;;  %s923_s23 = int_to_ptr.vmem [resolvable:$true] %s515_s23 }
  0x1b   : > { %613 = vmatpush3.msk.msra.mxu0 %vm302_vm1, %v220_v6  ;;  %269 = vperm.xlu0 %700, %v235_v13   ;;  %s702_s7 = scalar_lea.vmem %s923_s23, 32  ;;  %p709_p0 = scmp.lt.s32.totalorder %s923_s23, %s707_s8 }
  0x1c   : > { %615 = vmatmul.mubr.msk.f32.vlgmr.msra.gmra.mrb[0].mxu0 %vm277_vm0, %v222_v7  ;;  %274 = vperm.xlu1 %701, %v236_v14   ;;  %p703_p11 = scmp.ne.s32.totalorder %s923_s23, %s702_s7  ;;  %p710_p1 = scmp.lt.s32.totalorder %s708_s9, %s702_s7 }
  0x1d   : > { %617 = vmatprep.mubr.msk.f32.mxu0 %vm277_vm0, %v223_v8 }
  0x1e   : > { %p704_p12 = pnand %p703_p11, %p839_p5  ;;  %p711_p2 = por %p710_p1, %p709_p0 }
  0x1f   : > { %423 = vperm.xlu0 %700, %v420_v17  }
  0x20   : > { %618 = vmatmul.mubr.msk.f32.gmra.mrb[2].mxu0 %vm277_vm0, %v224_v11  ;;  %p705_p13 = pneg %p704_p12 }
  0x21   : > { %620 = vmatprep.mubr.msk.f32.mxu0 %vm277_vm0, %v225_v12 }
  0x22   : > { %p712_p3 = pnand %p711_p2, %p705_p13 }
  0x24   : > { %621 = vmatmul.mubr.msk.f32.gmra.mrb[4].mxu0 %vm277_vm0, %v226_v15 }
  0x25   : > { %623 = vmatprep.mubr.msk.f32.mxu0 %vm277_vm0, %v227_v16 }
  0x28   : > { %624 = vmatmul.mubr.msk.f32.gmra.mrb[6].mxu0 %vm277_vm0, %v228_v18 }
  0x8e   : > { %v240_v21 = vpop.permute.xlu0 %239 }
  0x8f   : > { %v250_v22 = vpop.permute.xlu1 %249 }
  0x92   : > { %v245_v23 = vpop.permute.xlu0 %244 }
  0x93   : > { %v255_v24 = vpop.permute.xlu1 %254 }
  0x96   : > { %v260_v37 = vpop.permute.xlu0 %259 }
  0x97   : > { %v265_v34 = vpop.permute.xlu1 %264 }
  0x9a   : > { %v270_v49 = vpop.permute.xlu0 %269 }
  0x9b   : > { %v275_v46 = vpop.permute.xlu1 %274 }
  0x9e   : > { %v424_v58 = vpop.permute.xlu0 %423 }
  0xef   : > { %v616_v25 = vpop.f32.mrb[0].mxu0 }
  0xf0   : > { %v378_v26 = vadd.f32 %v616_v25, %v245_v23  ;;  %v372_v27 = vpop.f32.mrb[1].mxu0 }
  0xf1   : > { %v373_v28 = vadd.f32 %v372_v27, %v240_v21 }
  0xf2   : > { %v412_v29 = vmax.f32 %v378_v26, 0.0 }
  0xf3   : > { %v411_v30 = vmax.f32 %v373_v28, 0.0  ;;  %v619_v31 = vpop.f32.mrb[2].mxu0 }
  0xf4   : > { %v388_v32 = vadd.f32 %v619_v31, %v255_v24  ;;  %v382_v33 = vpop.f32.mrb[3].mxu0 }
  0xf5   : > { %v383_v35 = vadd.f32 %v382_v33, %v250_v22  ;;  %v646_v36 = vpack.c.bf16 %v412_v29, %v411_v30 }
  0xf6   : > { %v414_v38 = vmax.f32 %v388_v32, 0.0 }
  0xf7   : > { %v413_v39 = vmax.f32 %v383_v35, 0.0  ;;  %v622_v40 = vpop.f32.mrb[4].mxu0  ;;  %647 = vmatpush3.bf16.msra.mxu1 %v646_v36 }
  0xf8   : > { %v398_v41 = vadd.f32 %v622_v40, %v265_v34  ;;  %v392_v42 = vpop.f32.mrb[5].mxu0  ;;  %648 = vmatprep.subr.bf16.mxu1 %v767_v19 }
  0xf9   : > { %v649_v43 = vpack.c.bf16 %v414_v38, %v413_v39  ;;  %v393_v44 = vadd.f32 %v392_v42, %v260_v37 }
  0xfa   : > { %v416_v45 = vmax.f32 %v398_v41, 0.0 }
  0xfb   : > { %v415_v47 = vmax.f32 %v393_v44, 0.0  ;;  %v625_v48 = vpop.f32.mrb[6].mxu0  ;;  %650 = vmatpush3.bf16.msra.mxu1 %v649_v43 }
  0xfc   : > { %v408_v50 = vadd.f32 %v625_v48, %v275_v46  ;;  %v402_v51 = vpop.f32.mrb[7].mxu0  ;;  %651 = vmatprep.subr.bf16.mxu1 %v767_v19 }
  0xfd   : > { %v652_v52 = vpack.c.bf16 %v416_v45, %v415_v47  ;;  %v403_v53 = vadd.f32 %v402_v51, %v270_v49 }
  0xfe   : > { %v418_v54 = vmax.f32 %v408_v50, 0.0 }
  0xff   : > { %v417_v55 = vmax.f32 %v403_v53, 0.0  ;;  %653 = vmatpush3.bf16.msra.mxu1 %v652_v52 }
 0x100   : > { %654 = vmatprep.subr.bf16.mxu1 %v767_v19 }
 0x101   : > { %v655_v56 = vpack.c.bf16 %v418_v54, %v417_v55 }
 0x103   : > { %656 = vmatpush3.bf16.msra.mxu1 %v655_v56 }
 0x106   : > { %643 = vmatmul.mubr.msk.f32.vlgmr.msra.gmra.mrb[0].mxu1 %vm426_vm3, %v419_v57 }
 0x1d9   : > { %v496_v59 = vpop.f32.mrb[0].mxu1 }
 0x1da   : > { %v497_v60 = vadd.f32 %v496_v59, %v424_v58  ;;  %v644_v61 = vpop.f32.mrb[1].mxu1 }
 0x1dc   : > { %500 = vst [vmem:[%s215_s17] sm:$0x3] %v497_v60 }
 0x1dd   : > { %715 = shalt.err (!%p712_p3)
}
 0x1de   : > { %s716_s10 = scalar_lea.hbm %s921_s30, 32  ;;  %s720_s13 = scalar_lea.hbm %s968_s5, 96 }
 0x1df   : > { %p717_p4 = scmp.ne.s32.totalorder %s921_s30, %s716_s10  ;;  %p721_p9 = scmp.lt.u32.totalorder %s921_s30, %s968_s5 }
 0x1e0   : > { %p722_p10 = scmp.lt.u32.totalorder %s720_s13, %s716_s10  ;;  %p724_p12 = scmp.lt.u32.totalorder %s716_s10, %s921_s30 }
 0x1e1   : > { %p718_p7 = pnand %p717_p4, %p839_p5 }
 0x1e2   : > { %p723_p11 = por %p722_p10, %p721_p9 }
 0x1e3   : > { %p719_p8 = pneg %p718_p7 }
 0x1e4   : > { %p725_p13 = por %p724_p12, %p723_p11 }
 0x1e6   : > { %p726_p0 = pnand %p725_p13, %p719_p8 }
 0x1e8   : > { %729 = shalt.err (!%p726_p0)
}
 0x1e9   : > { %657 = dma.vmem_to_hbm [thread:$0]  (%p839_p5), %s923_s23, 32, %s921_s30, %s502_s6  }
 0x1ea PF: > { %p663_p1 = scmp.ge.s32.totalorder %s764_s21, 2  ;;  %s527_s16 = sand.u32 1, %s752_s18  }
 0x1eb   : > { %s528_s17 = scalar_lea.sflag [#allocation3], %s527_s16 }
 0x1ec   : > { %p660_p2 = pnand %p663_p1, %p843_p6 }
 0x1ee   : > { %747 = dma.done.wait (!%p660_p2), %s528_s17, 32  }
 0x1ef   : > { %749 = vsyncadd (!%p660_p2), %s528_s17, 4294967264  ;;  %p15_p3 = scmp.ge.s32.totalorder %s826_s24, 5   ;;  %s971_s18 = smov %s756_s19 }
 0x1f0   : > { %s972_s19 = smov %s760_s20  ;;  %s973_s20 = smov %s837_s27 }
 0x1f1   : > { %s974_s21 = smov %s826_s24  ;;  %17 = sbr.rel (!%p15_p3) target bundleno = 3 (0x3), region = 75 }
 0x1f8   :  { %533 = vsyncpa [#allocation3], 1 }
 0x1f9   :  { %535 = vsyncpa [#allocation3 + $0x1], 1 }

</bundles_post_ra>
